<compile_context>
chip_gen: v7x
topology: tpu7x:2x2x1
jax: 0.10.0
libtpu: 0.0.40
codegen_flags: <defaults>
</compile_context>

<pallas_src>
import math
import functools

import jax
import jax.numpy as jnp
from jax.experimental import pallas as pl
from jax.experimental.pallas import tpu as pltpu


def _attn_kernel(*refs, num_heads, head_size, has_mask, approx_reciprocal):
    if has_mask:
        x_ref, wqkv_ref, bqkv_ref, mask_ref, out_ref, qkv_ref = refs
    else:
        x_ref, wqkv_ref, bqkv_ref, out_ref, qkv_ref = refs
        mask_ref = None

    # x_ref   : (1, S, H)   full sequence for this batch element (compute dtype)
    # wqkv_ref: (H, 3H)     fused [q*scale | k | v] projection weight
    # bqkv_ref: (1, 3H)     fused bias (f32), q part pre-scaled
    # mask_ref: (1, 1, S)   additive attention mask row (optional)
    # out_ref : (1, tq, H)  context layer (heads concatenated along hidden dim)
    # qkv_ref : (S, 3H)     persistent VMEM scratch holding the projections
    H = num_heads * head_size
    S = x_ref.shape[1]
    tq = out_ref.shape[1]
    qi = pl.program_id(1)
    cd = qkv_ref.dtype                     # compute dtype (set by the wrapper)

    # --- Fused Q|K|V projection: computed once per batch element (qi == 0) ---
    # (wq / bq already carry the 1/sqrt(d) factor, folded in the wrapper).
    @pl.when(qi == 0)
    def _():
        qkv = jnp.dot(x_ref[0], wqkv_ref[...],
                      preferred_element_type=jnp.float32) + bqkv_ref[0]
        qkv_ref[...] = qkv.astype(cd)

    # --- Slice this step's Q rows and the full K / V from the resident scratch.
    row0 = pl.multiple_of(qi * tq, tq)
    q = qkv_ref[pl.ds(row0, tq), :H]                       # [tq, H]
    k = qkv_ref[:, H:2 * H]                                # [S,  H]
    v = qkv_ref[:, 2 * H:]                                 # [S,  H]

    # Exactly one repack per direction: hidden -> (heads, d) ... -> hidden.
    q3 = q.reshape(tq, num_heads, head_size)
    k3 = k.reshape(S, num_heads, head_size)
    v3 = v.reshape(S, num_heads, head_size)

    # --- Batched QK^T: heads are a batch dim, contraction on d (no explicit .T)
    scores = jnp.einsum('qhd,khd->hqk', q3, k3,
                        preferred_element_type=jnp.float32)        # [nh, tq, S]
    if has_mask:
        scores = scores + mask_ref[0]                              # additive mask

    # --- Softmax in f32 -------------------------------------------------------
    scores = scores - jnp.max(scores, axis=-1, keepdims=True)
    p = jnp.exp(scores)
    denom = jnp.sum(p, axis=-1, keepdims=True)
    if approx_reciprocal:
        p = p * pl.reciprocal(denom, approx=True)                  # EUP slot
    else:
        p = p / denom
    # TODO(synk): attention_probs dropout (eval mode => identity), head_mask and
    #             relative_key* position embeddings are not implemented.

    # --- P @ V, batched over heads; one lane-dense [tq, H] store --------------
    ctx = jnp.einsum('hqk,khd->qhd', p.astype(cd), v3,
                     preferred_element_type=jnp.float32)           # [tq, nh, d]
    out_ref[0] = ctx.reshape(tq, H).astype(out_ref.dtype)


def _vmem_plan(S, H, nh, q_tile, x_itemsize, w_itemsize, has_mask):
    """Rough resident-VMEM estimate (bytes) split into fixed / per-tile parts."""
    fixed = (2 * 3 * H * H * w_itemsize          # wqkv input stream (double-buffered)
             + 2 * 3 * H * 4                     # bqkv (f32)
             + 2 * S * H * x_itemsize            # x block (double-buffered)
             + 3 * S * H * x_itemsize            # qkv VMEM scratch
             + (2 * S * 4 if has_mask else 0))   # mask block
    per_tile = (2 * q_tile * H * x_itemsize      # output block (double-buffered)
                + (q_tile + 2 * S) * H * 4       # q/k/v slice temporaries (worst case)
                + 3 * nh * q_tile * S * 4)       # scores / probs f32 temporaries
    return fixed, per_tile


def _pick_q_tile(S, H, nh, x_itemsize, w_itemsize, has_mask, vmem_cap):
    budget = int(vmem_cap * 0.55)                # headroom for Mosaic internal scratch
    candidates = [t for t in (512, 256, 128, 64) if t <= S and S % t == 0] or [S]
    for t in candidates:
        fixed, per_tile = _vmem_plan(S, H, nh, t, x_itemsize, w_itemsize, has_mask)
        if fixed + per_tile <= budget:
            return t
    return candidates[-1]
    # TODO(synk): for very long S (score temporaries alone exceed the budget at the
    #             smallest tile) a flash-style online-softmax KV grid axis is needed.


def sbert_self_attention(hidden_states, wq, bq, wk, bk, wv, bv,
                         attention_mask=None, *, num_heads,
                         q_tile=None, compute_dtype=None,
                         approx_reciprocal=True):
    """Fused SbertSelfAttention forward.

    hidden_states : [B, S, H]
    wq/wk/wv      : [H, H] pre-transposed to [in, out] (out = x @ W + b)
    bq/bk/bv      : [H]
    attention_mask: additive HF mask [B, 1, 1, S] or None
    """
    B, S, H = hidden_states.shape
    assert H % num_heads == 0
    head_size = H // num_heads
    out_dtype = hidden_states.dtype
    compute_dtype = jnp.dtype(out_dtype if compute_dtype is None else compute_dtype)

    # ---- Weight prep (done once at model-load time in a real deployment) ----
    scale = 1.0 / math.sqrt(head_size)
    wqkv = jnp.concatenate([wq * scale, wk, wv], axis=1).astype(compute_dtype)  # [H, 3H]
    bqkv = jnp.concatenate([bq * scale, bk, bv]).reshape(1, 3 * H).astype(jnp.float32)
    x = hidden_states.astype(compute_dtype)

    has_mask = attention_mask is not None
    x_itemsize = compute_dtype.itemsize
    w_itemsize = compute_dtype.itemsize

    try:
        vmem_cap = int(pltpu.get_tpu_info().vmem_capacity_bytes)
    except Exception:
        vmem_cap = 64 * 1024 * 1024              # conservative (v7x-sized) fallback

    if q_tile is None:
        q_tile = _pick_q_tile(S, H, num_heads, x_itemsize, w_itemsize,
                              has_mask, vmem_cap)
    assert S % q_tile == 0
    nqt = S // q_tile

    fixed, per_tile = _vmem_plan(S, H, num_heads, q_tile, x_itemsize,
                                 w_itemsize, has_mask)
    # 128 MiB parts (v5e/v6e): allow up to ~100 MiB; 64 MiB parts (v7x): <=48 MiB.
    hard_cap = 100 * 1024 * 1024 if vmem_cap >= 100 * 1024 * 1024 else 48 * 1024 * 1024
    vmem_limit = int(min(max(int((fixed + per_tile) * 1.4), 16 * 1024 * 1024), hard_cap))

    in_specs = [
        pl.BlockSpec((1, S, H),  lambda b, qi: (b, 0, 0)),   # x (re-DMA'd only when b changes)
        pl.BlockSpec((H, 3 * H), lambda b, qi: (0, 0)),      # wqkv (constant index -> one DMA)
        pl.BlockSpec((1, 3 * H), lambda b, qi: (0, 0)),      # bqkv
    ]
    inputs = [x, wqkv, bqkv]
    if has_mask:
        mask3 = attention_mask.reshape(B, 1, S).astype(jnp.float32)
        in_specs.append(pl.BlockSpec((1, 1, S), lambda b, qi: (b, 0, 0)))
        inputs.append(mask3)
    # TODO(synk): pipeline_mode=pl.Buffered(1) on the constant-index weight specs
    #             would reclaim their second pipeline buffer; left at the default
    #             for lowering-compat safety (their DMAs already fire only once).

    kernel = functools.partial(_attn_kernel, num_heads=num_heads,
                               head_size=head_size, has_mask=has_mask,
                               approx_reciprocal=approx_reciprocal)

    # Advisory cost estimate so XLA schedules surrounding ops around the kernel.
    flops = (2 * B * S * H * 3 * H               # fused QKV projection
             + 4 * B * S * S * H                 # QK^T + P@V
             + 6 * B * num_heads * S * S)        # mask add + softmax VPU work
    transcendentals = B * num_heads * S * S + B * num_heads * S
    bytes_accessed = (B * S * H * x_itemsize
                      + 3 * H * H * w_itemsize + 3 * H * 4
                      + (B * S * 4 if has_mask else 0)
                      + B * S * H * jnp.dtype(out_dtype).itemsize)

    return pl.pallas_call(
        kernel,
        out_shape=jax.ShapeDtypeStruct((B, S, H), out_dtype),
        grid_spec=pltpu.PrefetchScalarGridSpec(
            num_scalar_prefetch=0,
            grid=(B, nqt),
            in_specs=in_specs,
            out_specs=pl.BlockSpec((1, q_tile, H), lambda b, qi: (b, qi, 0)),
            scratch_shapes=[pltpu.VMEM((S, 3 * H), compute_dtype)],
        ),
        compiler_params=pltpu.CompilerParams(
            dimension_semantics=("parallel", "arbitrary"),
            vmem_limit_bytes=vmem_limit),
        cost_estimate=pl.CostEstimate(flops=flops,
                                      transcendentals=transcendentals,
                                      bytes_accessed=bytes_accessed),
    )(*inputs)


def _reference(hidden_states, wq, bq, wk, bk, wv, bv, attention_mask, num_heads):
    B, S, H = hidden_states.shape
    d = H // num_heads

    def split(t):  # [B,S,H] -> [B,nh,S,d]
        return t.reshape(B, S, num_heads, d).transpose(0, 2, 1, 3)

    q = split(hidden_states @ wq + bq)
    k = split(hidden_states @ wk + bk)
    v = split(hidden_states @ wv + bv)
    scores = jnp.einsum('bhld,bhrd->bhlr', q, k) / math.sqrt(d)
    scores = scores + attention_mask               # [B,1,1,S] broadcast
    probs = jax.nn.softmax(scores, axis=-1)
    ctx = jnp.einsum('bhlr,bhrd->bhld', probs, v)
    return ctx.transpose(0, 2, 1, 3).reshape(B, S, H)


if __name__ == "__main__":
    B, S, H, NH = 2, 8, 32, 4   # batch, seq, hidden, num_attention_heads

    key = jax.random.PRNGKey(0)
    ks = jax.random.split(key, 8)
    hidden_states = jax.random.normal(ks[0], (B, S, H), dtype=jnp.float32)
    wq = jax.random.normal(ks[1], (H, H), dtype=jnp.float32) * 0.05
    wk = jax.random.normal(ks[2], (H, H), dtype=jnp.float32) * 0.05
    wv = jax.random.normal(ks[3], (H, H), dtype=jnp.float32) * 0.05
    bq = jax.random.normal(ks[4], (H,), dtype=jnp.float32) * 0.05
    bk = jax.random.normal(ks[5], (H,), dtype=jnp.float32) * 0.05
    bv = jax.random.normal(ks[6], (H,), dtype=jnp.float32) * 0.05
    # Additive attention mask (0 = keep, -10000 = masked), HF-style [B,1,1,S].
    pad = (jax.random.uniform(ks[7], (B, S)) > 0.8).astype(jnp.float32)
    attention_mask = (pad * -10000.0).reshape(B, 1, 1, S)

    ref = _reference(hidden_states, wq, bq, wk, bk, wv, bv, attention_mask, NH)

    # f32 compute path (matches the PyTorch module's default dtype).
    out = sbert_self_attention(hidden_states, wq, bq, wk, bk, wv, bv,
                               attention_mask, num_heads=NH)
    out = jax.block_until_ready(out)
    assert out.shape == (B, S, H)
    # Tolerance accounts for the EUP approximate reciprocal in the softmax.
    assert jnp.allclose(out, ref, atol=5e-3, rtol=5e-3), \
        f"max abs err {jnp.max(jnp.abs(out - ref))}"

    # Mask-free path (mask DMA / add compiled out entirely).
    ref_nm = _reference(hidden_states, wq, bq, wk, bk, wv, bv,
                        jnp.zeros((B, 1, 1, S), jnp.float32), NH)
    out_nm = sbert_self_attention(hidden_states, wq, bq, wk, bk, wv, bv,
                                  None, num_heads=NH)
    out_nm = jax.block_until_ready(out_nm)
    assert jnp.allclose(out_nm, ref_nm, atol=5e-3, rtol=5e-3), \
        f"no-mask max abs err {jnp.max(jnp.abs(out_nm - ref_nm))}"

    # bf16-MXU compute path (wrapper-side casts, f32 accumulation, f32 softmax).
    out_bf16 = sbert_self_attention(hidden_states, wq, bq, wk, bk, wv, bv,
                                    attention_mask, num_heads=NH,
                                    compute_dtype=jnp.bfloat16)
    out_bf16 = jax.block_until_ready(out_bf16)
    assert jnp.allclose(out_bf16, ref, atol=1e-1, rtol=1e-1), \
        f"bf16 max abs err {jnp.max(jnp.abs(out_bf16 - ref))}"

    print("KERNEL_OK")
</pallas_src>

<mosaic_0001>
module attributes {stable_mosaic.version = 11 : i64} {
  func.func @_attn_kernel(%arg0: i32, %arg1: i32, %arg2: memref<1x8x32xf32, #tpu.memory_space<vmem>>, %arg3: memref<32x96xf32, #tpu.memory_space<vmem>>, %arg4: memref<1x96xf32, #tpu.memory_space<vmem>>, %arg5: memref<1x1x8xf32, #tpu.memory_space<vmem>>, %arg6: memref<1x8x32xf32, #tpu.memory_space<vmem>>, %arg7: memref<8x96xf32, #tpu.memory_space<vmem>>) attributes {dimension_semantics = [#tpu.dimension_semantics<parallel>, #tpu.dimension_semantics<arbitrary>], iteration_bounds = array<i64: 2, 1>, scalar_prefetch = 0 : i64, scratch_operands = 1 : i64, tpu.core_type = #tpu.core_type<tc>, window_params = [{transform_indices = @transform_0, window_bounds = array<i64: 1, 8, 32>}, {pipeline_mode = #tpu.pipeline_mode<synchronous>, transform_indices = @transform_1, window_bounds = array<i64: 32, 96>}, {pipeline_mode = #tpu.pipeline_mode<synchronous>, transform_indices = @transform_2, window_bounds = array<i64: 1, 96>}, {transform_indices = @transform_3, window_bounds = array<i64: 1, 1, 8>}, {transform_indices = @transform_4, window_bounds = array<i64: 1, 8, 32>}]} {
    %c0_i32 = arith.constant 0 : i32
    %0 = arith.cmpi eq, %arg1, %c0_i32 : i32
    %1 = arith.extui %0 : i1 to i32
    %c0_i32_0 = arith.constant 0 : i32
    %2 = arith.cmpi ne, %1, %c0_i32_0 : i32
    scf.if %2 {
      %c0_12 = arith.constant 0 : index
      %c0_13 = arith.constant 0 : index
      %c0_14 = arith.constant 0 : index
      %34 = vector.load %arg2[%c0_12, %c0_13, %c0_14] : memref<1x8x32xf32, #tpu.memory_space<vmem>>, vector<1x8x32xf32>
      %35 = vector.shape_cast %34 : vector<1x8x32xf32> to vector<8x32xf32>
      %c0_15 = arith.constant 0 : index
      %c0_16 = arith.constant 0 : index
      %36 = vector.load %arg3[%c0_15, %c0_16] : memref<32x96xf32, #tpu.memory_space<vmem>>, vector<32x96xf32>
      %cst_17 = arith.constant dense<0.000000e+00> : vector<8x96xf32>
      %37 = tpu.matmul %35, %36, %cst_17 {dimension_numbers = #tpu.dot_dimension_numbers<[1], [0], [0], [1], [0, 0, 1, 1], [], []>} : vector<8x32xf32>, vector<32x96xf32>, vector<8x96xf32> -> vector<8x96xf32>
      %c0_18 = arith.constant 0 : index
      %c0_19 = arith.constant 0 : index
      %38 = vector.load %arg4[%c0_18, %c0_19] : memref<1x96xf32, #tpu.memory_space<vmem>>, vector<1x96xf32>
      %39 = vector.shape_cast %38 : vector<1x96xf32> to vector<96xf32>
      %40 = vector.shape_cast %39 : vector<96xf32> to vector<1x96xf32>
      %41 = vector.broadcast %40 : vector<1x96xf32> to vector<8x96xf32>
      %42 = arith.addf %37, %41 : vector<8x96xf32>
      %c0_20 = arith.constant 0 : index
      %c0_21 = arith.constant 0 : index
      %43 = vector.load %arg7[%c0_20, %c0_21] : memref<8x96xf32, #tpu.memory_space<vmem>>, vector<8x96xf32>
      tpu.vector_store %arg7[%c0_20, %c0_21], %42 {strides = array<i32>} : memref<8x96xf32, #tpu.memory_space<vmem>>, vector<8x96xf32>,
    } else {
    }
    %c8_i32 = arith.constant 8 : i32
    %3 = arith.muli %arg1, %c8_i32 : i32
    %4 = tpu.assume_multiple %3, 8 : i32
    %5 = arith.index_cast %4 : i32 to index
    %c0 = arith.constant 0 : index
    %6 = vector.load %arg7[%5, %c0] : memref<8x96xf32, #tpu.memory_space<vmem>>, vector<8x32xf32>
    %c0_1 = arith.constant 0 : index
    %c32 = arith.constant 32 : index
    %7 = vector.load %arg7[%c0_1, %c32] : memref<8x96xf32, #tpu.memory_space<vmem>>, vector<8x32xf32>
    %c0_2 = arith.constant 0 : index
    %c64 = arith.constant 64 : index
    %8 = vector.load %arg7[%c0_2, %c64] : memref<8x96xf32, #tpu.memory_space<vmem>>, vector<8x32xf32>
    %9 = vector.shape_cast %6 : vector<8x32xf32> to vector<8x4x8xf32>
    %10 = vector.shape_cast %7 : vector<8x32xf32> to vector<8x4x8xf32>
    %11 = vector.shape_cast %8 : vector<8x32xf32> to vector<8x4x8xf32>
    "tpu.trace_start"() <{level = 10 : i32, message = "qhd,khd->hqk"}> : () -> ()
    %cst = arith.constant dense<0.000000e+00> : vector<4x8x8xf32>
    %12 = tpu.matmul %9, %10, %cst {dimension_numbers = #tpu.dot_dimension_numbers<[2], [2], [0], [0], [0, 1, 0, 0, 1, 0], [1], [1]>} : vector<8x4x8xf32>, vector<8x4x8xf32>, vector<4x8x8xf32> -> vector<4x8x8xf32>
    "tpu.trace_stop"() : () -> ()
    %c0_3 = arith.constant 0 : index
    %c0_4 = arith.constant 0 : index
    %c0_5 = arith.constant 0 : index
    %13 = vector.load %arg5[%c0_3, %c0_4, %c0_5] : memref<1x1x8xf32, #tpu.memory_space<vmem>>, vector<1x1x8xf32>
    %14 = vector.shape_cast %13 : vector<1x1x8xf32> to vector<1x8xf32>
    %15 = vector.shape_cast %14 : vector<1x8xf32> to vector<1x1x8xf32>
    %16 = vector.broadcast %15 : vector<1x1x8xf32> to vector<4x8x8xf32>
    %17 = arith.addf %12, %16 : vector<4x8x8xf32>
    %cst_6 = arith.constant dense<0xFF800000> : vector<4x8xf32>
    %18 = vector.multi_reduction <maximumf>, %17, %cst_6 [2] : vector<4x8x8xf32> to vector<4x8xf32>
    %19 = vector.shape_cast %18 : vector<4x8xf32> to vector<4x8x1xf32>
    %20 = vector.broadcast %19 : vector<4x8x1xf32> to vector<4x8x8xf32>
    %21 = arith.subf %17, %20 : vector<4x8x8xf32>
    %22 = math.exp %21 : vector<4x8x8xf32>
    %cst_7 = arith.constant dense<0.000000e+00> : vector<4x8xf32>
    %23 = vector.multi_reduction <add>, %22, %cst_7 [2] : vector<4x8x8xf32> to vector<4x8xf32>
    %24 = vector.shape_cast %23 : vector<4x8xf32> to vector<4x8x1xf32>
    %25 = tpu.reciprocal %24 {approx = true} : vector<4x8x1xf32> -> vector<4x8x1xf32>
    %26 = vector.broadcast %25 : vector<4x8x1xf32> to vector<4x8x8xf32>
    %27 = arith.mulf %22, %26 : vector<4x8x8xf32>
    "tpu.trace_start"() <{level = 10 : i32, message = "hqk,khd->qhd"}> : () -> ()
    %cst_8 = arith.constant dense<0.000000e+00> : vector<4x8x8xf32>
    %28 = tpu.matmul %11, %27, %cst_8 {dimension_numbers = #tpu.dot_dimension_numbers<[0], [2], [2], [1], [0, 1, 0, 2, 1, 1], [1], [0]>} : vector<8x4x8xf32>, vector<4x8x8xf32>, vector<4x8x8xf32> -> vector<4x8x8xf32>
    %29 = tpu.transpose %28, [2, 0, 1] : vector<4x8x8xf32> -> vector<8x4x8xf32>
    "tpu.trace_stop"() : () -> ()
    %30 = vector.shape_cast %29 : vector<8x4x8xf32> to vector<8x32xf32>
    %c0_9 = arith.constant 0 : index
    %c0_10 = arith.constant 0 : index
    %c0_11 = arith.constant 0 : index
    %31 = vector.load %arg6[%c0_9, %c0_10, %c0_11] : memref<1x8x32xf32, #tpu.memory_space<vmem>>, vector<1x8x32xf32>
    %32 = vector.shape_cast %31 : vector<1x8x32xf32> to vector<8x32xf32>
    %33 = vector.shape_cast %30 : vector<8x32xf32> to vector<1x8x32xf32>
    tpu.vector_store %arg6[%c0_9, %c0_10, %c0_11], %33 {strides = array<i32>} : memref<1x8x32xf32, #tpu.memory_space<vmem>>, vector<1x8x32xf32>,
    return
  }
  func.func @transform_0(%arg0: i32, %arg1: i32) -> (i32, i32, i32) {
    %c0_i32 = arith.constant 0 : i32
    %c0_i32_0 = arith.constant 0 : i32
    %c0_i32_1 = arith.constant 0 : i32
    return %arg0, %c0_i32, %c0_i32_0 : i32, i32, i32
  }
  func.func @transform_1(%arg0: i32, %arg1: i32) -> (i32, i32) {
    %c0_i32 = arith.constant 0 : i32
    %c0_i32_0 = arith.constant 0 : i32
    %c0_i32_1 = arith.constant 0 : i32
    return %c0_i32, %c0_i32_0 : i32, i32
  }
  func.func @transform_2(%arg0: i32, %arg1: i32) -> (i32, i32) {
    %c0_i32 = arith.constant 0 : i32
    %c0_i32_0 = arith.constant 0 : i32
    %c0_i32_1 = arith.constant 0 : i32
    return %c0_i32, %c0_i32_0 : i32, i32
  }
  func.func @transform_3(%arg0: i32, %arg1: i32) -> (i32, i32, i32) {
    %c0_i32 = arith.constant 0 : i32
    %c0_i32_0 = arith.constant 0 : i32
    %c0_i32_1 = arith.constant 0 : i32
    return %arg0, %c0_i32, %c0_i32_0 : i32, i32, i32
  }
  func.func @transform_4(%arg0: i32, %arg1: i32) -> (i32, i32, i32) {
    %c0_i32 = arith.constant 0 : i32
    %c0_i32_0 = arith.constant 0 : i32
    return %arg0, %arg1, %c0_i32 : i32, i32, i32
  }
}

</mosaic_0001>

<bundles_post_ra>
// kernel: tpu_custom_call.1
= control target key start
LH: loop header
LB: loop body
LE: loop exit
PB: predicated region body
PF: predicated region fallthrough
CT: control target
= control target key end

     0   :  { %9 = vsyncpa [#allocation4], 0  ;;  %s2389_s0 = inlined_call_operand.hbm [shape: f32[2,8,32], index: 0, kind: input, shape index: {}]   ;;  %s2390_s1 = inlined_call_operand.hbm [shape: f32[32,96], index: 1, kind: input, shape index: {}]   ;;  %s2391_s2 = inlined_call_operand.vmem [shape: f32[1,96], index: 2, kind: input, shape index: {}]   ;;  %s2392_s3 = inlined_call_operand.vmem [shape: f32[2,1,8], index: 3, kind: input, shape index: {}]   ;;  %s2393_s4 = inlined_call_operand.hbm [shape: f32[2,8,32], index: 4, kind: output, shape index: {}]  }
   0x1   :  { %11 = vsyncpa [#allocation4 + $0x1], 0 }
   0x2   :  { %12 = vsyncpa [#allocation7], 0 }
   0x3   :  { %13 = vsyncpa [#allocation5], 0 }
   0x4   :  { %15 = vsyncpa [#allocation5 + $0x1], 0  ;;  %s2091_s15 = smov 0   ;;  %s2093_s16 = smov 0  }
   0x5   :  { %s2095_s17 = smov 0   ;;  %s2097_s18 = smov 0  }
   0x6   :  { %s2099_s19 = smov 0   ;;  %s2101_s20 = smov 0  }
   0x7 LB: > { %s1688_s21 = sadd.s32 4294967295, %s2046_s20   ;;  %s1689_s22 = sadd.s32 4294967294, %s2046_s20   ;;  %s2046_s20 = sphi %s2101_s20, %s21_s20   ;;  %s2042_s19 = sphi %s2099_s19, %s2417_s19   ;;  %s2038_s18 = sphi %s2097_s18, %s2416_s18   ;;  %s2034_s17 = sphi %s2095_s17, %s2415_s17   ;;  %s2030_s16 = sphi %s2093_s16, %s2414_s16   ;;  %s2026_s15 = sphi %s2091_s15, %s2413_s15  }
   0x8   : > { %p53_p0 = scmp.ne.s32.totalorder %s2030_s16, %s2026_s15  ;;  %p2125_p1 = scmp.eq.s32.totalorder %s1688_s21, 0 }
   0x9   : > { %p2129_p2 = scmp.eq.s32.totalorder %s1688_s21, 1  ;;  %p153_p3 = scmp.eq.s32.totalorder %s1689_s22, 1 }
   0xa   : > { %s2398_s23 = scalar_select %p2125_p1, 1, 0 }
   0xb   : > { %s2399_s24 = scalar_select %p2129_p2, 1, 0 }
   0xc   : > { %p2135_p4 = por %p2125_p1, %p53_p0  ;;  %p1690_p5 = scmp.ge.s32.totalorder %s2046_s20, 1 }
   0xd   : > { %p2140_p6 = por %p153_p3, %p53_p0  ;;  %p160_p7 = scmp.lt.s32.totalorder %s2046_s20, 3 }
   0xe   : > { %s2400_s25 = scalar_select %p2135_p4, 1, 0 }
   0xf   : > { %s2401_s26 = scalar_select %p2140_p6, 1, 0 }
  0x10   : > { %p2145_p8 = pnand %p1690_p5, %p160_p7  ;;  %s2048_s28 = smov [#allocation6]  }
  0x11   : > { %s172_s29 = sshll.u32 %s2048_s28, 4  ;;  %s33_s5 = sadd.s32 1, %s2042_s19  ;;  %s173_s29 = int_to_ptr.vmem [resolvable:$true] %s172_s29 }
  0x12   : > { %s2402_s27 = scalar_select %p2145_p8, 1, 0 }
  0x13   : > { %p1806_p9 = pneg %p2145_p8  ;;  %s1902_s8 = scalar_lea.hbm %s2390_s1, 512 }
  0x14   : > { %p1903_p12 = scmp.ne.s32.totalorder %s2390_s1, %s1902_s8  ;;  %p1909_p5 = scmp.lt.u32.totalorder %s1902_s8, %s2390_s1 }
  0x15   : > { %p2154_p11 = pnand %p1806_p9, %p2125_p1 }
  0x17   : > { %p1904_p13 = pneg %p2154_p11 }
  0x19   : > { %p1905_p0 = pnand %p1904_p13, %p1903_p12 }
  0x1b   : > { %p1906_p3 = pneg %p1905_p0 }
  0x1d   : > { %p1911_p7 = pnand %p1909_p5, %p1906_p3 }
  0x1f   : > { %1914 = shalt.err (!%p1911_p7)
}
  0x20   : > { %s1915_s13 = scalar_lea.vmem %s173_s29, 512  ;;  %p1923_p1 = scmp.lt.s32.totalorder %s173_s29, %s173_s29 }
  0x21   : > { %p1916_p9 = scmp.ne.s32.totalorder %s173_s29, %s1915_s13  ;;  %p1924_p4 = scmp.lt.s32.totalorder %s1915_s13, %s1915_s13 }
  0x23   : > { %p1918_p10 = pnand %p1916_p9, %p1904_p13  ;;  %p1925_p8 = por %p1924_p4, %p1923_p1 }
  0x25   : > { %p1919_p6 = pneg %p1918_p10 }
  0x27   : > { %p1926_p2 = pnand %p1925_p8, %p1919_p6 }
  0x29   : > { %1929 = shalt.err (!%p1926_p2)
}
  0x2a   : > { %s2049_s14 = smov 128   ;;  %s2050_s21 = smov 8  }
  0x2b   : > { %1809 = dma.hbm_to_vmem [thread:$0]  (!%p2154_p11), %s2390_s1, 512, %s173_s29, [#allocation7], %s2049_s14, %s2049_s14, %s2050_s21  }
  0x2c   : > { %p35_p1 = scmp.ge.s32.totalorder %s33_s5, 2  ;;  %s40_s6 = sadd.s32 1, %s2034_s17 }
  0x2d   : > { %p47_p2 = scmp.ne.s32.totalorder %s2034_s17, %s2030_s16  ;;  %p48_p4 = scmp.eq.s32.totalorder %s2046_s20, 0 }
  0x2e   : > { %s2419_s5 = smov (%p35_p1, %s33_s5), 0  ;;  %p2405_p8 = scmp.ne.s32.totalorder %s2399_s24, 0 }
  0x2f   : > { %p2181_p6 = por %p48_p4, %p47_p2  ;;  %s37_s30 = ssub.s32 %s2042_s19, %s2419_s5 }
  0x30   : > { %p2187_p10 = por %p2405_p8, %p47_p2  ;;  %p1819_p12 = scmp.lt.s32.totalorder %s2046_s20, 2 }
  0x31   : > { %p38_p11 = scmp.eq.s32.totalorder %s37_s30, 0  ;;  %s189_s29 = sand.u32 1, %s2034_s17  }
  0x32   : > { %s1693_s9 = sshll.u32 %s189_s29, 3  ;;  %s1694_s11 = sshll.u32 %s2042_s19, 7 }
  0x33   : > { %s2196_s10 = scalar_select %p38_p11, %s2034_s17, %s40_s6  }
  0x34   : > { %s2202_s14 = scalar_lea.hbm %s2389_s0, %s1694_s11  ;;  %s193_s24 = scalar_lea.vmem [#allocation3], %s1693_s9 }
  0x35   : > { %s200_s21 = sshll.u32 %s193_s24, 4  ;;  %p2208_p13 = pnand %p1819_p12, %p2181_p6  ;;  %s2204_s21 = int_to_ptr.vmem [resolvable:$true] %s200_s21 }
  0x36   : > { %s190_s28 = scalar_lea.sflag [#allocation4], %s189_s29  ;;  %s1930_s6 = scalar_lea.hbm %s2202_s14, 128 }
  0x37   : > { %p1931_p0 = scmp.ne.s32.totalorder %s2202_s14, %s1930_s6  ;;  %p1932_p3 = pneg %p2208_p13 }
  0x38   : > { %s1935_s11 = scalar_lea.hbm %s2389_s0, 256  ;;  %p1936_p9 = scmp.lt.u32.totalorder %s2202_s14, %s2389_s0 }
  0x39   : > { %p1933_p5 = pnand %p1932_p3, %p1931_p0  ;;  %p1937_p1 = scmp.lt.u32.totalorder %s1935_s11, %s1930_s6 }
  0x3a   : > { %p1939_p4 = scmp.lt.u32.totalorder %s1930_s6, %s2202_s14 }
  0x3b   : > { %p1934_p7 = pneg %p1933_p5  ;;  %p1938_p2 = por %p1937_p1, %p1936_p9 }
  0x3d   : > { %p1940_p6 = por %p1939_p4, %p1938_p2 }
  0x3f   : > { %p1941_p8 = pnand %p1940_p6, %p1934_p7 }
  0x41   : > { %1944 = shalt.err (!%p1941_p8)
}
  0x42   : > { %s1945_s29 = scalar_lea.vmem %s2204_s21, 128  ;;  %s2051_s13 = smov [#allocation3]  }
  0x43   : > { %p1946_p12 = scmp.ne.s32.totalorder %s2204_s21, %s1945_s29  ;;  %s1950_s24 = sshll.u32 %s2051_s13, 4  ;;  %s1951_s24 = int_to_ptr.vmem [resolvable:$false] %s1950_s24 }
  0x44   : > { %s1952_s30 = scalar_lea.vmem %s1951_s24, 256  ;;  %p1953_p5 = scmp.lt.s32.totalorder %s2204_s21, %s1951_s24 }
  0x45   : > { %p1948_p11 = pnand %p1946_p12, %p1932_p3  ;;  %p1954_p9 = scmp.lt.s32.totalorder %s1952_s30, %s1945_s29 }
  0x47   : > { %p1949_p0 = pneg %p1948_p11  ;;  %p1955_p1 = por %p1954_p9, %p1953_p5 }
  0x49   : > { %p1956_p2 = pnand %p1955_p1, %p1949_p0 }
  0x4b   : > { %1959 = shalt.err (!%p1956_p2)
}
  0x4c   : > { %1813 = dma.hbm_to_vmem [thread:$0]  (!%p2208_p13), %s2202_s14, 128, %s2204_s21, %s190_s28  }
  0x4d   : > { %p2408_p7 = scmp.ne.s32.totalorder %s2402_s27, 0 }
  0x4e   : > { %s2240_s6 = sand.u32 (!%p2408_p7), 1, %s2030_s16   ;;  %p2409_p3 = scmp.ne.s32.totalorder (!%p2408_p7), %s2400_s25, 0 }
  0x4f   : > { %215 = sbr.rel (%p2408_p7) target bundleno = 1735 (0x6c7), region = 36  ;;  %s1696_s9 = sshll.u32 (!%p2408_p7), %s2240_s6, 3 }
  0x50   : > { %s218_s11 = scalar_lea.sflag (!%p2408_p7), [#allocation4], %s2240_s6  ;;  %s221_s7 = scalar_lea.vmem (!%p2408_p7), [#allocation3], %s1696_s9 }
  0x56   : > { %2013 = dma.done.wait (%p2409_p3), %s218_s11, 128  }
  0x57   : > { %2015 = vsyncadd (%p2409_p3), %s218_s11, 4294967168  ;;  %p2410_p13 = scmp.ne.s32.totalorder %s2398_s23, 0 }
  0x59   : > { %2017 = dma.done.wait (%p2410_p13), [#allocation7], 512  }
  0x5a   : > { %2019 = vsyncadd (%p2410_p13), [#allocation7], 4294966784  ;;  %v2052_v0 = vmov 0.0|0.0   ;;  %vm2053_vm0 = vmmov 0   ;;  %v2054_v1 = vmov 0.0   ;;  %v261_v2 = vld [vmem:[#allocation6] sm:$0xff] }
  0x5b   : > { %1792 = vmatprep.subr.bf16.mxu0 %v2052_v0  ;;  %1749 = vmatprep.mubr.msk.f32.mxu0 %vm2053_vm0, %v2054_v1  ;;  %v262_v3 = vld [vmem:[#allocation6 + $0x8] sm:$0xff]  ;;  %v263_v4 = vld [vmem:[#allocation6 + $0x10] sm:$0xff]  ;;  %v264_v6 = vld [vmem:[#allocation6 + $0x18] sm:$0xff]  ;;  %vm272_vm1 = vcmask 261120   ;;  %vm346_vm2 = vcmask 785408   ;;  %s2055_s27 = smov 104  }
  0x5c   : > { %1752 = vmatprep.subr.mxu1 %v2054_v1  ;;  %1754 = vmatprep.mubr.msk.f32.mxu1 %vm2053_vm0, %v2054_v1  ;;  %v1793_v5 = vpack.c.bf16 %v262_v3, %v261_v2  ;;  %v1796_v7 = vpack.c.bf16 %v264_v6, %v263_v4  ;;  %v260_v8 = vld [vmem:[%s221_s7] sm:$0xff]  ;;  %v1699_v9 = vld [vmem:[%s2391_s2] ss:$0 sm:$0xff]  ;;  %s2056_s14 = smov 120   ;;  %s2057_s21 = smov 96   ;;  %vm513_vm3 = vcmask 64512  }
  0x5d   : > { %s2058_s22 = smov 112   ;;  %p253_p4 = scmp.lt.s32.totalorder %s2038_s18, 1  ;;  %vm1567_vm4 = vcmask 130048   ;;  %vm1569_vm5 = vcmask 195584  }
  0x5e   : > { %1794 = vmatpush3.bf16.msra.mxu0 %v1793_v5  ;;  %s2059_s24 = smov 64   ;;  %s2062_s30 = smov 16  }
  0x5f   : > { %1795 = vmatprep.subr.bf16.mxu0 %v2052_v0  ;;  %s254_s28 = scalar_select %p253_p4, %s2038_s18, 1 }
  0x60   : > { %s2063_s11 = smov 8   ;;  %s2064_s7 = smov 24  }
  0x61   : > { %s255_s13 = scalar_lea.vmem %s2392_s3, %s254_s28  ;;  %s1717_s23 = sshll.u32 %s2038_s18, 7 }
  0x62   : > { %1797 = vmatpush3.bf16.msra.mxu0 %v1796_v7  ;;  %v1701_v28 = vld [vmem:[%s255_s13] ss:$0 sm:$0xff]  ;;  %s252_s25 = scalar_lea.vmem [#allocation8], %s1696_s9  ;;  %s1574_s18 = scalar_lea.sflag [#allocation5], %s2240_s6 }
  0x63   : > { %1767 = vmatprep.subr.mxu0 %v2054_v1  ;;  %s2065_s9 = smov [#allocation8]  }
  0x64   : > { %s1964_s12 = sshll.u32 %s2065_s9, 4  ;;  %s1965_s12 = int_to_ptr.vmem [resolvable:$false] %s1964_s12 }
  0x65   : > { %1750 = vmatmul.mubr.msk.f32.vlgmr.msra.gmra.mrb[0].mxu0 %vm272_vm1, %v260_v8  ;;  %s1966_s29 = scalar_lea.vmem %s1965_s12, 256 }
  0x66   : > { %1769 = vmatprep.mubr.msk.f32.mxu0 %vm2053_vm0, %v2054_v1 }
 0x138   : > { %v342_v10 = vpop.f32.mrb[0].mxu0 }
 0x139   : > { %v343_v11 = vadd.f32 %v1699_v9, %v342_v10  ;;  %v1751_v12 = vpop.f32.mrb[1].mxu0 }
 0x13b   : > { %347 = vst.msk [vmem:[#allocation2] sm:$0xff] %vm346_vm2, %v343_v11 }
 0x142   : > { %v2266_v13 = vld [vmem:[#allocation2] sm:$0xff] }
 0x143   : > { %364 = vrot.lane.b32.xlu1 %v2266_v13, %s2055_s27  ;;  %360 = vrot.lane.b32.xlu0 %v2266_v13, %s2056_s14 }
 0x147   : > { %373 = vrot.lane.b32.xlu1 %v2266_v13, %s2057_s21  ;;  %362 = vrot.lane.b32.xlu0 %v2266_v13, %s2058_s22 }
 0x1b5   : > { %v2272_v14 = vpop.permute.xlu0 %360  ;;  %v2275_v15 = vpop.permute.xlu1 %364 }
 0x1b6   : > { %375 = vrot.lane.b32.xlu0 %v2272_v14, %s2057_s21 }
 0x1b9   : > { %v2277_v16 = vpop.permute.xlu0 %362  ;;  %v374_v17 = vpop.permute.xlu1 %373 }
 0x1ba   : > { %379 = vrot.lane.b32.xlu0 %v2275_v15, %s2057_s21  ;;  %377 = vrot.lane.b32.xlu1 %v2277_v16, %s2057_s21 }
 0x1be   : > { %355 = vrot.lane.b32.xlu0 %v2266_v13, %s2058_s22  ;;  %353 = vrot.lane.b32.xlu1 %v2266_v13, %s2056_s14  ;;  %s2339_s22 = scalar_lea.hbm %s2393_s4, %s1717_s23 }
 0x1c2   : > { %357 = vrot.lane.b32.xlu1 %v2266_v13, %s2055_s27  ;;  %s1588_s27 = sshll.u32 %s252_s25, 4  ;;  %s2341_s27 = int_to_ptr.vmem [resolvable:$true] %s1588_s27 }
 0x1c3   : > { %s1960_s28 = scalar_lea.vmem %s2341_s27, 128  ;;  %p1967_p11 = scmp.lt.s32.totalorder %s2341_s27, %s1965_s12 }
 0x1c4   : > { %p1961_p6 = scmp.ne.s32.totalorder %s2341_s27, %s1960_s28  ;;  %p1968_p0 = scmp.lt.s32.totalorder %s1966_s29, %s1960_s28 }
 0x1c6   : > { %p1962_p8 = pnand %p1961_p6, %p2187_p10  ;;  %p1969_p5 = por %p1968_p0, %p1967_p11 }
 0x1c8   : > { %p1963_p12 = pneg %p1962_p8 }
 0x1ca   : > { %p1970_p9 = pnand %p1969_p5, %p1963_p12 }
 0x1dc   : > { %385 = vxpose.xlu0.b32.start.end [1/1] (short) (narrow) %v374_v17, 8 }
 0x228   : > { %v376_v18 = vpop.permute.xlu0 %375 }
 0x229   : > { %417 = vxpose.xlu1.b32.start.end [1/1] (short) (narrow) %v376_v18, 8 }
 0x22c   : > { %v378_v19 = vpop.permute.xlu1 %377  ;;  %v380_v20 = vpop.permute.xlu0 %379 }
 0x22d   : > { %449 = vxpose.xlu0.b32.start.end [1/1] (short) (narrow) %v378_v19, 8 }
 0x230   : > { %v356_v21 = vpop.permute.xlu0 %355  ;;  %v354_v23 = vpop.permute.xlu1 %353 }
 0x231   : > { %481 = vxpose.xlu0.b32.start.end [1/1] (short) (narrow) %v380_v20, 8 }
 0x234   : > { %v358_v24 = vpop.permute.xlu1 %357 }
 0x25c   : > { %v401_v22 = vpop.trf.xlu0 }
 0x25d   : > { %1753 = vmatpush3.msra.mxu1 %v401_v22 }
 0x25e   : > { %1755 = vmatmul.mubr.msk.f32.vlgmr.msra.gmra.mrb[0].mxu1 %vm513_vm3, %v2266_v13  ;;  %1757 = vmatprep.subr.mxu1 %v2054_v1 }
 0x25f   : > { %1759 = vmatprep.mubr.msk.f32.mxu1 %vm2053_vm0, %v2054_v1 }
 0x2a9   : > { %v433_v25 = vpop.trf.xlu1 }
 0x2aa   : > { %1758 = vmatpush3.msra.mxu1 %v433_v25 }
 0x2ab   : > { %1760 = vmatmul.mubr.msk.f32.vlgmr.msra.gmra.mrb[2].mxu1 %vm513_vm3, %v354_v23  ;;  %1762 = vmatprep.subr.mxu1 %v2054_v1 }
 0x2ac   : > { %1764 = vmatprep.mubr.msk.f32.mxu1 %vm2053_vm0, %v2054_v1 }
 0x2ad   : > { %v465_v26 = vpop.trf.xlu0 }
 0x2ae   : > { %1763 = vmatpush3.msra.mxu1 %v465_v26 }
 0x2af   : > { %1765 = vmatmul.mubr.msk.f32.vlgmr.msra.gmra.mrb[4].mxu1 %vm513_vm3, %v356_v21  ;;  %1772 = vmatprep.subr.mxu1 %v2054_v1 }
 0x2b0   : > { %1774 = vmatprep.mubr.msk.f32.mxu1 %vm2053_vm0, %v2054_v1 }
 0x2b1   : > { %v497_v27 = vpop.trf.xlu0 }
 0x2b2   : > { %1768 = vmatpush3.msra.mxu0 %v497_v27 }
 0x2b3   : > { %1770 = vmatmul.mubr.msk.f32.vlgmr.msra.gmra.mrb[2].mxu0 %vm513_vm3, %v358_v24  ;;  %1777 = vmatprep.subr.mxu0 %v2054_v1 }
 0x2b4   : > { %1779 = vmatprep.mubr.msk.f32.mxu0 %vm2053_vm0, %v2054_v1 }
 0x331   : > { %v582_v29 = vpop.f32.mrb[0].mxu1 }
 0x332   : > { %v583_v30 = vadd.f32 %v1701_v28, %v582_v29  ;;  %v1756_v31 = vpop.f32.mrb[1].mxu1 }
 0x334   : > { %v802_v32 = vsel %vm513_vm3, %v583_v30, -inf }
 0x335   : > { %803 = vmax.xlane.f32.xlu0 %v802_v32 }
 0x37e   : > { %v654_v33 = vpop.f32.mrb[2].mxu1 }
 0x37f   : > { %v655_v34 = vadd.f32 %v1701_v28, %v654_v33  ;;  %v1761_v35 = vpop.f32.mrb[3].mxu1  ;;  %v2061_v33 = vmov 1934713408  }
 0x381   : > { %v805_v36 = vsel %vm513_vm3, %v655_v34, -inf }
 0x382   : > { %806 = vmax.xlane.f32.xlu1 %v805_v36  ;;  %v726_v37 = vpop.f32.mrb[4].mxu1 }
 0x383   : > { %v727_v38 = vadd.f32 %v1701_v28, %v726_v37  ;;  %v1766_v39 = vpop.f32.mrb[5].mxu1 }
 0x385   : > { %v808_v40 = vsel %vm513_vm3, %v727_v38, -inf }
 0x386   : > { %809 = vmax.xlane.f32.xlu1 %v808_v40  ;;  %v798_v41 = vpop.f32.mrb[2].mxu0 }
 0x387   : > { %v799_v42 = vadd.f32 %v1701_v28, %v798_v41  ;;  %v1771_v43 = vpop.f32.mrb[3].mxu0 }
 0x389   : > { %v811_v44 = vsel %vm513_vm3, %v799_v42, -inf }
 0x38a   : > { %812 = vmax.xlane.f32.xlu0 %v811_v44 }
 0x397   : > { %846 = vrot.lane.b32.xlu1 %v2266_v13, %s2059_s24 }
 0x39b   : > { %850 = vrot.lane.b32.xlu1 %v2277_v16, %s2059_s24 }
 0x39f   : > { %852 = vrot.lane.b32.xlu1 %v2275_v15, %s2059_s24 }
 0x3a0   : > { %848 = vrot.lane.b32.xlu0 %v2272_v14, %s2059_s24 }
 0x3c2   : > { %v804_v45 = vpop.xlane.xlu0 %803 }
 0x3c3   : > { %v814_v46 = vsub.f32 %v583_v30, %v804_v45  ;;  %v2060_v30 = vmov 1983009808  }
 0x3c4   : > { %v1421_v31 = vunpack.c.l.s4 %v2060_v30 }
 0x3c5   : > { %v818_v47 = vmul.f32 1.442695, %v814_v46 }
 0x3c6   : > { %v1422_v35 = vunpack.c.0.s8 %v1421_v31 }
 0x3c7   : > { %1886 = vpow2.f32 %v818_v47 }
 0x3d1   : > { %v1887_v48 = vpop.eup %1886 }
 0x3d2   : > { %v826_v49 = vsel %vm513_vm3, %v1887_v48, 0.0 }
 0x3d3   : > { %827 = vadd.xlane.f32.xlu0 %v826_v49 }
 0x40f   : > { %v807_v50 = vpop.xlane.xlu1 %806 }
 0x410   : > { %v815_v51 = vsub.f32 %v655_v34, %v807_v50  ;;  %v1453_v34 = vunpack.c.l.s4 %v2061_v33 }
 0x412   : > { %v820_v52 = vmul.f32 1.442695, %v815_v51 }
 0x413   : > { %v810_v53 = vpop.xlane.xlu1 %809 }
 0x414   : > { %1888 = vpow2.f32 %v820_v52  ;;  %v816_v54 = vsub.f32 %v727_v38, %v810_v53  ;;  %v1454_v38 = vunpack.c.0.s8 %v1453_v34 }
 0x416   : > { %v822_v55 = vmul.f32 1.442695, %v816_v54 }
 0x417   : > { %v813_v56 = vpop.xlane.xlu0 %812  ;;  %v847_v2 = vpop.permute.xlu1 %846 }
 0x418   : > { %1890 = vpow2.f32 %v822_v55  ;;  %v817_v57 = vsub.f32 %v799_v42, %v813_v56 }
 0x41a   : > { %v824_v58 = vmul.f32 1.442695, %v817_v57 }
 0x41b   : > { %v851_v3 = vpop.permute.xlu1 %850  ;;  %v849_v4 = vpop.permute.xlu0 %848 }
 0x41c   : > { %1892 = vpow2.f32 %v824_v58 }
 0x41e   : > { %v1889_v59 = vpop.eup %1888 }
 0x41f   : > { %v829_v60 = vsel %vm513_vm3, %v1889_v59, 0.0  ;;  %v853_v5 = vpop.permute.xlu1 %852 }
 0x420   : > { %830 = vadd.xlane.f32.xlu1 %v829_v60 }
 0x422   : > { %v1891_v61 = vpop.eup %1890 }
 0x423   : > { %v832_v62 = vsel %vm513_vm3, %v1891_v61, 0.0 }
 0x424   : > { %833 = vadd.xlane.f32.xlu0 %v832_v62 }
 0x426   : > { %v1893_v63 = vpop.eup %1892 }
 0x427   : > { %v835_v0 = vsel %vm513_vm3, %v1893_v63, 0.0 }
 0x428   : > { %836 = vadd.xlane.f32.xlu0 %v835_v0 }
 0x453   : > { %858 = vxpose.xlu1.b32.start.end [1/1] (short) (narrow) %v847_v2, 8 }
 0x455   : > { %890 = vxpose.xlu0.b32.start.end [1/1] (short) (narrow) %v849_v4, 8 }
 0x457   : > { %954 = vxpose.xlu1.b32.start.end [1/1] (short) (narrow) %v853_v5, 8 }
 0x459   : > { %922 = vxpose.xlu0.b32.start.end [1/1] (short) (narrow) %v851_v3, 8 }
 0x460   : > { %v828_v6 = vpop.xlane.xlu0 %827 }
 0x461   : > { %1894 = vrcp.f32 %v828_v6 }
 0x46b   : > { %v1895_v7 = vpop.eup %1894 }
 0x46c   : > { %v842_v8 = vmul.f32 %v1895_v7, %v1887_v48 }
 0x46e   : > { %1773 = vmatpush3.xpose.msk.msra.mxu1 %vm513_vm3, %v842_v8 }
 0x46f   : > { %1782 = vmatprep.subr.mxu1 %v2054_v1 }
 0x4ad   : > { %v831_v9 = vpop.xlane.xlu1 %830 }
 0x4ae   : > { %1896 = vrcp.f32 %v831_v9 }
 0x4b1   : > { %v834_v12 = vpop.xlane.xlu0 %833 }
 0x4b2   : > { %1898 = vrcp.f32 %v834_v12 }
 0x4b5   : > { %v837_v13 = vpop.xlane.xlu0 %836 }
 0x4b6   : > { %1900 = vrcp.f32 %v837_v13 }
 0x4b8   : > { %v1897_v10 = vpop.eup %1896 }
 0x4b9   : > { %v843_v11 = vmul.f32 %v1897_v10, %v1889_v59 }
 0x4bb   : > { %1778 = vmatpush3.xpose.msk.msra.mxu0 %vm513_vm3, %v843_v11 }
 0x4bc   : > { %1787 = vmatprep.subr.mxu0 %v2054_v1  ;;  %v1899_v14 = vpop.eup %1898 }
 0x4bd   : > { %v844_v16 = vmul.f32 %v1899_v14, %v1891_v61 }
 0x4c0   : > { %v1901_v15 = vpop.eup %1900 }
 0x4c1   : > { %v845_v18 = vmul.f32 %v1901_v15, %v1893_v63 }
 0x4d3   : > { %v874_v17 = vpop.trf.xlu1 }
 0x4d4   : > { %1775 = vmatmul.mubr.msk.f32.vlgmr.msra.gmra.mrb[6].mxu1 %vm513_vm3, %v874_v17 }
 0x4d5   : > { %1783 = vmatpush3.xpose.msk.msra.mxu1 %vm513_vm3, %v844_v16  ;;  %v906_v19 = vpop.trf.xlu0  ;;  %1784 = vmatprep.mubr.msk.f32.mxu1 %vm2053_vm0, %v2054_v1 }
 0x4d6   : > { %1780 = vmatmul.mubr.msk.f32.vlgmr.msra.gmra.mrb[4].mxu0 %vm513_vm3, %v906_v19 }
 0x4d7   : > { %1788 = vmatpush3.xpose.msk.msra.mxu0 %vm513_vm3, %v845_v18  ;;  %v970_v20 = vpop.trf.xlu1  ;;  %1789 = vmatprep.mubr.msk.f32.mxu0 %vm2053_vm0, %v2054_v1  ;;  %v1423_v1 = vlaneseq }
 0x4d9   : > { %v938_v21 = vpop.trf.xlu0  ;;  %v1424_v36 = vshrl.u32 %v1423_v1, 7 }
 0x4da   : > { %1785 = vmatmul.mubr.msk.f32.vlgmr.msra.gmra.mrb[8].mxu1 %vm513_vm3, %v938_v21  ;;  %1790 = vmatmul.mubr.msk.f32.vlgmr.msra.gmra.mrb[6].mxu0 %vm513_vm3, %v970_v20 }
 0x4db   : > { %v1425_v39 = vsub.s32 %v1422_v35, %v1424_v36  ;;  %v1457_v46 = vsub.s32 %v1454_v38, %v1424_v36 }
 0x5a7   : > { %v1058_v22 = vpop.f32.mrb[6].mxu1 }
 0x5a8   : > { %1290 = vxpose.xlu0.b32.start.end [1/1] (short) (narrow) %v1058_v22, 8  ;;  %v1776_v23 = vpop.f32.mrb[7].mxu1 }
 0x5a9   : > { %v1134_v24 = vpop.f32.mrb[4].mxu0 }
 0x5aa   : > { %1322 = vxpose.xlu1.b32.start.end [1/1] (short) (narrow) %v1134_v24, 8  ;;  %v1781_v25 = vpop.f32.mrb[5].mxu0 }
 0x5ad   : > { %v1210_v26 = vpop.f32.mrb[8].mxu1  ;;  %v1286_v27 = vpop.f32.mrb[6].mxu0 }
 0x5ae   : > { %1354 = vxpose.xlu0.b32.start.end [1/1] (short) (narrow) %v1210_v26, 8  ;;  %1386 = vxpose.xlu1.b32.start.end [1/1] (short) (narrow) %v1286_v27, 8  ;;  %v1786_v28 = vpop.f32.mrb[9].mxu1  ;;  %v1791_v29 = vpop.f32.mrb[7].mxu0 }
 0x628   : > { %v1306_v32 = vpop.trf.xlu0 }
 0x62a   : > { %v1338_v37 = vpop.trf.xlu1 }
 0x62e   : > { %v1370_v40 = vpop.trf.xlu0  ;;  %v1402_v41 = vpop.trf.xlu1 }
 0x62f   : > { %v1418_v42 = vcombine.low %v1306_v32, %v1370_v40  ;;  %v1419_v43 = vcombine.high %v1306_v32, %v1370_v40  ;;  %v1434_v44 = vcombine.low %v1338_v37, %v1402_v41  ;;  %v1435_v45 = vcombine.high %v1338_v37, %v1402_v41 }
 0x631   : > { %v1426_v47 = vrot.slane %v1418_v42, %v1425_v39  ;;  %v1433_v48 = vrot.slane %v1419_v43, %v1425_v39  ;;  %v1442_v49 = vrot.slane %v1434_v44, %v1425_v39  ;;  %v1449_v50 = vrot.slane %v1435_v45, %v1425_v39 }
 0x633   : > { %v1450_v51 = vcombine.low %v1426_v47, %v1442_v49  ;;  %v1451_v52 = vcombine.high %v1426_v47, %v1442_v49  ;;  %v1466_v53 = vcombine.low %v1433_v48, %v1449_v50  ;;  %v1467_v54 = vcombine.high %v1433_v48, %v1449_v50 }
 0x635   : > { %v1458_v55 = vrot.slane %v1450_v51, %v1457_v46  ;;  %v1465_v56 = vrot.slane %v1451_v52, %v1457_v46  ;;  %v1474_v57 = vrot.slane %v1466_v53, %v1457_v46  ;;  %v1481_v58 = vrot.slane %v1467_v54, %v1457_v46 }
 0x637   : > { %v1486_v59 = vcombine.low %v1458_v55, %v1465_v56  ;;  %v1714_v60 = vcombine.high %v1458_v55, %v1465_v56  ;;  %v1502_v61 = vcombine.low %v1474_v57, %v1481_v58  ;;  %v1715_v62 = vcombine.high %v1474_v57, %v1481_v58 }
 0x639   : > { %v1493_v63 = vrot.slane %v1486_v59, %v1425_v39  ;;  %v1501_v0 = vrot.slane %v1714_v60, %v1425_v39  ;;  %v1509_v2 = vrot.slane %v1502_v61, %v1425_v39  ;;  %v1517_v3 = vrot.slane %v1715_v62, %v1425_v39 }
 0x63b   : > { %v1519_v4 = vcombine.high %v1493_v63, %v1501_v0  ;;  %v1535_v5 = vcombine.high %v1509_v2, %v1517_v3  ;;  %v1518_v6 = vcombine.low %v1493_v63, %v1501_v0  ;;  %v1534_v7 = vcombine.low %v1509_v2, %v1517_v3 }
 0x63d   : > { %v1533_v8 = vrot.slane %v1519_v4, %v1457_v46  ;;  %v1549_v9 = vrot.slane %v1535_v5, %v1457_v46  ;;  %v1526_v10 = vrot.slane %v1518_v6, %v1457_v46  ;;  %v1542_v11 = vrot.slane %v1534_v7, %v1457_v46 }
 0x63f   : > { %v1552_v12 = vcombine.low %v1533_v8, %v1549_v9  ;;  %v1551_v13 = vcombine.high %v1526_v10, %v1542_v11  ;;  %v1550_v14 = vcombine.low %v1526_v10, %v1542_v11  ;;  %v1553_v15 = vcombine.high %v1533_v8, %v1549_v9 }
 0x641   : > { %1559 = vrot.lane.b32.xlu1 %v1552_v12, %s2062_s30  ;;  %1555 = vrot.lane.b32.xlu0 %v1551_v13, %s2063_s11 }
 0x645   : > { %1563 = vrot.lane.b32.xlu1 %v1553_v15, %s2064_s7 }
 0x6b3   : > { %v1560_v16 = vpop.permute.xlu1 %1559  ;;  %v1556_v17 = vpop.permute.xlu0 %1555 }
 0x6b4   : > { %v1566_v18 = vsel %vm513_vm3, %v1550_v14, %v1556_v17 }
 0x6b5   : > { %v1568_v20 = vsel %vm1567_vm4, %v1566_v18, %v1560_v16 }
 0x6b7   : > { %v1564_v19 = vpop.permute.xlu1 %1563 }
 0x6b8   : > { %v1570_v21 = vsel %vm1569_vm5, %v1568_v20, %v1564_v19 }
 0x6b9   : > { %1572 = vst.msk [vmem:[%s252_s25] sm:$0xff] %vm272_vm1, %v1570_v21 }
 0x6ba   : > { %1973 = shalt.err (!%p1970_p9)
}
 0x6bb   : > { %s1974_s6 = scalar_lea.hbm %s2339_s22, 128  ;;  %s1978_s30 = scalar_lea.hbm %s2393_s4, 256 }
 0x6bc   : > { %p1975_p1 = scmp.ne.s32.totalorder %s2339_s22, %s1974_s6  ;;  %p1979_p3 = scmp.lt.u32.totalorder %s2339_s22, %s2393_s4 }
 0x6bd   : > { %p1980_p13 = scmp.lt.u32.totalorder %s1978_s30, %s1974_s6  ;;  %p1982_p6 = scmp.lt.u32.totalorder %s1974_s6, %s2339_s22 }
 0x6be   : > { %p1976_p2 = pnand %p1975_p1, %p2187_p10 }
 0x6bf   : > { %p1981_p4 = por %p1980_p13, %p1979_p3 }
 0x6c0   : > { %p1977_p7 = pneg %p1976_p2 }
 0x6c1   : > { %p1983_p8 = por %p1982_p6, %p1981_p4 }
 0x6c3   : > { %p1984_p12 = pnand %p1983_p8, %p1977_p7 }
 0x6c5   : > { %1987 = shalt.err (!%p1984_p12)
}
 0x6c6   : > { %1804 = dma.vmem_to_hbm [thread:$0]  (%p2187_p10), %s2341_s27, 128, %s2339_s22, %s1574_s18  }
 0x6c7 PF: > { %s1600_s23 = sand.u32 1, %s2026_s15   ;;  %p2411_p11 = scmp.ne.s32.totalorder %s2401_s26, 0 }
 0x6c8   : > { %p2412_p0 = scmp.ge.s32.totalorder %s2046_s20, 2  ;;  %s1601_s25 = scalar_lea.sflag [#allocation5], %s1600_s23 }
 0x6ca   : > { %p1815_p5 = pnand %p2412_p0, %p2411_p11 }
 0x6cc   : > { %2021 = dma.done.wait (!%p1815_p5), %s1601_s25, 128  }
 0x6cd   : > { %2023 = vsyncadd (!%p1815_p5), %s1601_s25, 4294967168  ;;  %s21_s20 = sadd.s32 1, %s2046_s20   ;;  %s2413_s15 = smov %s2030_s16 }
 0x6ce   : > { %p18_p9 = scmp.ge.s32.totalorder %s21_s20, 4   ;;  %s2414_s16 = smov %s2034_s17 }
 0x6cf   : > { %s2415_s17 = smov %s2196_s10  ;;  %s2416_s18 = smov %s2042_s19 }
 0x6d0   : > { %s2417_s19 = smov %s2419_s5  ;;  %20 = sbr.rel (!%p18_p9) target bundleno = 7 (0x7), region = 93 }
 0x6d7   :  { %1606 = vsyncpa [#allocation4], 1 }
 0x6d8   :  { %1608 = vsyncpa [#allocation4 + $0x1], 1 }
 0x6d9   :  { %1609 = vsyncpa [#allocation7], 1 }
 0x6da   :  { %1610 = vsyncpa [#allocation5], 1 }
 0x6db   :  { %1612 = vsyncpa [#allocation5 + $0x1], 1 }

</bundles_post_ra>
